<compile_context>
chip_gen: v7x
topology: tpu7x:2x2x1
jax: 0.10.0
libtpu: 0.0.40
codegen_flags: <defaults>
</compile_context>

<pallas_src>
import jax
import jax.numpy as jnp
from jax.experimental import pallas as pl
from jax.experimental.pallas import tpu as pltpu


def adaptor_domain_kernel(in_ref, w1_ref, b1_ref, w2_ref, b2_ref, seg_ref,
                          out_ref, local_ref):
    # relu on the (lane-packed) input tile -- elementwise, so packing-agnostic.
    x = jnp.maximum(in_ref[...], 0.0)

    # lin1 (block-diagonal): [bn, 8*in_dim] @ [8*in_dim, 8*hidden] + b1 (tiled 8x)
    h = jnp.dot(x, w1_ref[...], preferred_element_type=jnp.float32) + b1_ref[...]
    local_ref[...] = h.astype(local_ref.dtype)

    # lin2 (block-diagonal): [bn, 8*hidden] @ [8*hidden, 8*out_dim] + b2 (tiled 8x)
    y = jnp.dot(h, w2_ref[...], preferred_element_type=jnp.float32) + b2_ref[...]
    y = jnp.maximum(y, 0.0)

    # F.normalize(p=2, dim=1) per ORIGINAL row (= per 16-lane segment).
    # Segmented sum-of-squares via one MXU matmul against kron(I_8, ones(16,16)):
    # each lane of a segment receives that segment's sum(y*y), already broadcast.
    sumsq = jnp.dot(y * y, seg_ref[...], preferred_element_type=jnp.float32)
    # max(sqrt(s), 1e-12) == sqrt(max(s, 1e-24)) -> EUP rsqrt, no divide.
    inv = jax.lax.rsqrt(jnp.maximum(sumsq, 1e-24))
    out_ref[...] = (y * inv).astype(out_ref.dtype)


def prepare_adaptor_params(w1, b1, w2, b2, *, pack=8):
    """One-time layout prep (call once, reuse across forward calls).

    w1: [hidden, in_dim], b1: [hidden], w2: [out_dim, hidden], b2: [out_dim]
    (PyTorch nn.Linear conventions).

    Builds block-diagonal weights so `pack` batch rows are processed per packed
    row, making every kernel-visible array lane-dense (>=128-lane multiples for
    the default 32/64/16 dims with pack=8).
    """
    w1 = jnp.asarray(w1, jnp.float32)
    b1 = jnp.asarray(b1, jnp.float32)
    w2 = jnp.asarray(w2, jnp.float32)
    b2 = jnp.asarray(b2, jnp.float32)

    hidden, in_dim = w1.shape
    out_dim = w2.shape[0]

    eye = jnp.eye(pack, dtype=jnp.float32)
    w1_bd = jnp.kron(eye, w1.T)                                # [pack*in_dim, pack*hidden]
    w2_bd = jnp.kron(eye, w2.T)                                # [pack*hidden, pack*out_dim]
    seg = jnp.kron(eye, jnp.ones((out_dim, out_dim), jnp.float32))  # [pack*out_dim]^2
    b1_p = jnp.tile(b1.reshape(1, -1), (1, pack))              # [1, pack*hidden]
    b2_p = jnp.tile(b2.reshape(1, -1), (1, pack))              # [1, pack*out_dim]

    return {
        "w1_bd": w1_bd, "b1": b1_p, "w2_bd": w2_bd, "b2": b2_p, "seg": seg,
        "pack": pack, "in_dim": in_dim, "hidden": hidden, "out_dim": out_dim,
    }


def adaptor_domain_forward(inp, params, *, block_rows=8192):
    """inp: [N, in_dim] float32; params from prepare_adaptor_params().

    block_rows: row-tile size in ORIGINAL batch rows (default 8192 -> 1024
    packed rows, well under a 32 MiB VMEM budget on all of v5e/v6e/v7x).
    """
    pack = params["pack"]
    in_dim, hidden, out_dim = params["in_dim"], params["hidden"], params["out_dim"]
    w1_bd, b1_p, w2_bd, b2_p, seg = (params[k] for k in
                                     ("w1_bd", "b1", "w2_bd", "b2", "seg"))

    n = inp.shape[0]
    assert inp.shape[1] == in_dim, "input feature dim mismatch"

    # Pad batch up to a multiple of `pack`; padded rows are garbage but purely
    # row-local (never mixed into valid rows) and sliced off at the end.
    n_pad = ((n + pack - 1) // pack) * pack
    x = inp if n_pad == n else jnp.pad(inp, ((0, n_pad - n), (0, 0)))
    np_rows = n_pad // pack

    # Free contiguous reshape: 8 consecutive rows packed along lanes.
    xp = x.reshape(np_rows, pack * in_dim)

    cin, chid, cout = pack * in_dim, pack * hidden, pack * out_dim

    # Row tile over packed rows: whole batch if small, else big fixed tiles
    # (multiple of 8 for the sublane constraint; partial last tile is fine --
    # all per-row math is independent and padded rows are never written back).
    bn_target = max(1, block_rows // pack)
    if np_rows <= bn_target:
        bn = np_rows
    else:
        bn = max(8, (bn_target // 8) * 8)
    grid = ((np_rows + bn - 1) // bn,)

    out_p, local_p = pl.pallas_call(
        adaptor_domain_kernel,
        out_shape=(
            jax.ShapeDtypeStruct((np_rows, cout), jnp.float32),
            jax.ShapeDtypeStruct((np_rows, chid), jnp.float32),
        ),
        grid=grid,
        in_specs=[
            pl.BlockSpec((bn, cin), lambda i: (i, 0)),        # packed input rows
            pl.BlockSpec((cin, chid), lambda i: (0, 0)),      # block-diag W1^T: resident
            pl.BlockSpec((1, chid), lambda i: (0, 0)),        # tiled b1: resident
            pl.BlockSpec((chid, cout), lambda i: (0, 0)),     # block-diag W2^T: resident
            pl.BlockSpec((1, cout), lambda i: (0, 0)),        # tiled b2: resident
            pl.BlockSpec((cout, cout), lambda i: (0, 0)),     # segment-sum matrix: resident
        ],
        out_specs=(
            pl.BlockSpec((bn, cout), lambda i: (i, 0)),       # packed normalized output
            pl.BlockSpec((bn, chid), lambda i: (i, 0)),       # packed local_features
        ),
        compiler_params=pltpu.CompilerParams(
            dimension_semantics=("parallel",),        # megacore shard on v7x
            vmem_limit_bytes=32 * 1024 * 1024,        # safe on v5e/v6e/v7x
        ),
    )(xp, w1_bd, b1_p, w2_bd, b2_p, seg)

    # Free contiguous un-pack + (no-op unless padded) slice back to N rows.
    out = out_p.reshape(n_pad, out_dim)[:n]
    local = local_p.reshape(n_pad, hidden)[:n]
    return out, local


def _ref_forward(inp, w1, b1, w2, b2):
    x = jnp.maximum(inp, 0.0)
    h = x @ w1.T + b1
    y = jnp.maximum(h @ w2.T + b2, 0.0)
    norm = jnp.sqrt(jnp.sum(y * y, axis=1, keepdims=True))
    return y / jnp.maximum(norm, 1e-12), h


if __name__ == "__main__":
    IN_DIM, HIDDEN, OUT_DIM = 32, 64, 16
    INITRANGE = 0.1

    key = jax.random.PRNGKey(0)
    k_in1, k_in2, k_in3, k_w1, k_w2 = jax.random.split(key, 5)

    # Deterministic init mirroring init_weights: uniform(-initrange, initrange), zero biases.
    w1 = jax.random.uniform(k_w1, (HIDDEN, IN_DIM), dtype=jnp.float32,
                            minval=-INITRANGE, maxval=INITRANGE)
    b1 = jnp.zeros((HIDDEN,), dtype=jnp.float32)
    w2 = jax.random.uniform(k_w2, (OUT_DIM, HIDDEN), dtype=jnp.float32,
                            minval=-INITRANGE, maxval=INITRANGE)
    b2 = jnp.zeros((OUT_DIM,), dtype=jnp.float32)

    params = prepare_adaptor_params(w1, b1, w2, b2)

    # Case 1: small batch, multiple of pack -> single tile.
    inp1 = jax.random.normal(k_in1, (64, IN_DIM), dtype=jnp.float32)
    out1, local1 = adaptor_domain_forward(inp1, params)
    jax.block_until_ready(out1)
    jax.block_until_ready(local1)
    out1_ref, local1_ref = _ref_forward(inp1, w1, b1, w2, b2)
    assert jnp.allclose(out1, out1_ref, atol=1e-5), "case1: normalized output mismatch"
    assert jnp.allclose(local1, local1_ref, atol=1e-5), "case1: local_features mismatch"

    # Case 2: batch not a multiple of pack (200 -> pad to 208), small tile to
    # exercise a multi-step grid with a partial last tile (26 packed rows, bn=8).
    inp2 = jax.random.normal(k_in2, (200, IN_DIM), dtype=jnp.float32)
    out2, local2 = adaptor_domain_forward(inp2, params, block_rows=64)
    jax.block_until_ready(out2)
    jax.block_until_ready(local2)
    out2_ref, local2_ref = _ref_forward(inp2, w1, b1, w2, b2)
    assert jnp.allclose(out2, out2_ref, atol=1e-5), "case2: normalized output mismatch"
    assert jnp.allclose(local2, local2_ref, atol=1e-5), "case2: local_features mismatch"

    # Case 3: default (large) tile path on a modest batch.
    inp3 = jax.random.normal(k_in3, (512, IN_DIM), dtype=jnp.float32)
    out3, local3 = adaptor_domain_forward(inp3, params)
    jax.block_until_ready(out3)
    jax.block_until_ready(local3)
    out3_ref, local3_ref = _ref_forward(inp3, w1, b1, w2, b2)
    assert jnp.allclose(out3, out3_ref, atol=1e-5), "case3: normalized output mismatch"
    assert jnp.allclose(local3, local3_ref, atol=1e-5), "case3: local_features mismatch"

    print("KERNEL_OK")
</pallas_src>

<mosaic_0001>
module attributes {stable_mosaic.version = 11 : i64} {
  func.func @adaptor_domain_kernel(%arg0: i32, %arg1: memref<8x256xf32, #tpu.memory_space<vmem>>, %arg2: memref<256x512xf32, #tpu.memory_space<vmem>>, %arg3: memref<1x512xf32, #tpu.memory_space<vmem>>, %arg4: memref<512x128xf32, #tpu.memory_space<vmem>>, %arg5: memref<1x128xf32, #tpu.memory_space<vmem>>, %arg6: memref<128x128xf32, #tpu.memory_space<vmem>>, %arg7: memref<8x128xf32, #tpu.memory_space<vmem>>, %arg8: memref<8x512xf32, #tpu.memory_space<vmem>>) attributes {dimension_semantics = [#tpu.dimension_semantics<parallel>], iteration_bounds = array<i64: 1>, scalar_prefetch = 0 : i64, scratch_operands = 0 : i64, tpu.core_type = #tpu.core_type<tc>, window_params = [{transform_indices = @transform_0, window_bounds = array<i64: 8, 256>}, {pipeline_mode = #tpu.pipeline_mode<synchronous>, transform_indices = @transform_1, window_bounds = array<i64: 256, 512>}, {pipeline_mode = #tpu.pipeline_mode<synchronous>, transform_indices = @transform_2, window_bounds = array<i64: 1, 512>}, {pipeline_mode = #tpu.pipeline_mode<synchronous>, transform_indices = @transform_3, window_bounds = array<i64: 512, 128>}, {pipeline_mode = #tpu.pipeline_mode<synchronous>, transform_indices = @transform_4, window_bounds = array<i64: 1, 128>}, {pipeline_mode = #tpu.pipeline_mode<synchronous>, transform_indices = @transform_5, window_bounds = array<i64: 128, 128>}, {transform_indices = @transform_6, window_bounds = array<i64: 8, 128>}, {transform_indices = @transform_7, window_bounds = array<i64: 8, 512>}]} {
    %c0 = arith.constant 0 : index
    %c0_0 = arith.constant 0 : index
    %0 = vector.load %arg1[%c0, %c0_0] : memref<8x256xf32, #tpu.memory_space<vmem>>, vector<8x256xf32>
    %cst = arith.constant 0.000000e+00 : f32
    %1 = vector.broadcast %cst : f32 to vector<8x256xf32>
    %2 = arith.maximumf %0, %1 : vector<8x256xf32>
    %c0_1 = arith.constant 0 : index
    %c0_2 = arith.constant 0 : index
    %3 = vector.load %arg2[%c0_1, %c0_2] : memref<256x512xf32, #tpu.memory_space<vmem>>, vector<256x512xf32>
    %cst_3 = arith.constant dense<0.000000e+00> : vector<8x512xf32>
    %4 = tpu.matmul %2, %3, %cst_3 {dimension_numbers = #tpu.dot_dimension_numbers<[1], [0], [0], [1], [0, 0, 1, 1], [], []>} : vector<8x256xf32>, vector<256x512xf32>, vector<8x512xf32> -> vector<8x512xf32>
    %c0_4 = arith.constant 0 : index
    %c0_5 = arith.constant 0 : index
    %5 = vector.load %arg3[%c0_4, %c0_5] : memref<1x512xf32, #tpu.memory_space<vmem>>, vector<1x512xf32>
    %6 = vector.broadcast %5 : vector<1x512xf32> to vector<8x512xf32>
    %7 = arith.addf %4, %6 : vector<8x512xf32>
    %c0_6 = arith.constant 0 : index
    %c0_7 = arith.constant 0 : index
    %8 = vector.load %arg8[%c0_6, %c0_7] : memref<8x512xf32, #tpu.memory_space<vmem>>, vector<8x512xf32>
    tpu.vector_store %arg8[%c0_6, %c0_7], %7 {strides = array<i32>} : memref<8x512xf32, #tpu.memory_space<vmem>>, vector<8x512xf32>,
    %c0_8 = arith.constant 0 : index
    %c0_9 = arith.constant 0 : index
    %9 = vector.load %arg4[%c0_8, %c0_9] : memref<512x128xf32, #tpu.memory_space<vmem>>, vector<512x128xf32>
    %cst_10 = arith.constant dense<0.000000e+00> : vector<8x128xf32>
    %10 = tpu.matmul %7, %9, %cst_10 {dimension_numbers = #tpu.dot_dimension_numbers<[1], [0], [0], [1], [0, 0, 1, 1], [], []>} : vector<8x512xf32>, vector<512x128xf32>, vector<8x128xf32> -> vector<8x128xf32>
    %c0_11 = arith.constant 0 : index
    %c0_12 = arith.constant 0 : index
    %11 = vector.load %arg5[%c0_11, %c0_12] : memref<1x128xf32, #tpu.memory_space<vmem>>, vector<1x128xf32>
    %12 = vector.broadcast %11 : vector<1x128xf32> to vector<8x128xf32>
    %13 = arith.addf %10, %12 : vector<8x128xf32>
    %cst_13 = arith.constant 0.000000e+00 : f32
    %14 = vector.broadcast %cst_13 : f32 to vector<8x128xf32>
    %15 = arith.maximumf %13, %14 : vector<8x128xf32>
    %16 = arith.mulf %15, %15 : vector<8x128xf32>
    %c0_14 = arith.constant 0 : index
    %c0_15 = arith.constant 0 : index
    %17 = vector.load %arg6[%c0_14, %c0_15] : memref<128x128xf32, #tpu.memory_space<vmem>>, vector<128x128xf32>
    %cst_16 = arith.constant dense<0.000000e+00> : vector<8x128xf32>
    %18 = tpu.matmul %16, %17, %cst_16 {dimension_numbers = #tpu.dot_dimension_numbers<[1], [0], [0], [1], [0, 0, 1, 1], [], []>} : vector<8x128xf32>, vector<128x128xf32>, vector<8x128xf32> -> vector<8x128xf32>
    %cst_17 = arith.constant 1.000000e-24 : f32
    %19 = vector.broadcast %cst_17 : f32 to vector<8x128xf32>
    %20 = arith.maximumf %18, %19 : vector<8x128xf32>
    %21 = math.rsqrt %20 : vector<8x128xf32>
    %22 = arith.mulf %15, %21 : vector<8x128xf32>
    %c0_18 = arith.constant 0 : index
    %c0_19 = arith.constant 0 : index
    %23 = vector.load %arg7[%c0_18, %c0_19] : memref<8x128xf32, #tpu.memory_space<vmem>>, vector<8x128xf32>
    tpu.vector_store %arg7[%c0_18, %c0_19], %22 {strides = array<i32>} : memref<8x128xf32, #tpu.memory_space<vmem>>, vector<8x128xf32>,
    return
  }
  func.func @transform_0(%arg0: i32) -> (i32, i32) {
    %c0_i32 = arith.constant 0 : i32
    %c0_i32_0 = arith.constant 0 : i32
    return %arg0, %c0_i32 : i32, i32
  }
  func.func @transform_1(%arg0: i32) -> (i32, i32) {
    %c0_i32 = arith.constant 0 : i32
    %c0_i32_0 = arith.constant 0 : i32
    %c0_i32_1 = arith.constant 0 : i32
    return %c0_i32, %c0_i32_0 : i32, i32
  }
  func.func @transform_2(%arg0: i32) -> (i32, i32) {
    %c0_i32 = arith.constant 0 : i32
    %c0_i32_0 = arith.constant 0 : i32
    %c0_i32_1 = arith.constant 0 : i32
    return %c0_i32, %c0_i32_0 : i32, i32
  }
  func.func @transform_3(%arg0: i32) -> (i32, i32) {
    %c0_i32 = arith.constant 0 : i32
    %c0_i32_0 = arith.constant 0 : i32
    %c0_i32_1 = arith.constant 0 : i32
    return %c0_i32, %c0_i32_0 : i32, i32
  }
  func.func @transform_4(%arg0: i32) -> (i32, i32) {
    %c0_i32 = arith.constant 0 : i32
    %c0_i32_0 = arith.constant 0 : i32
    %c0_i32_1 = arith.constant 0 : i32
    return %c0_i32, %c0_i32_0 : i32, i32
  }
  func.func @transform_5(%arg0: i32) -> (i32, i32) {
    %c0_i32 = arith.constant 0 : i32
    %c0_i32_0 = arith.constant 0 : i32
    %c0_i32_1 = arith.constant 0 : i32
    return %c0_i32, %c0_i32_0 : i32, i32
  }
  func.func @transform_6(%arg0: i32) -> (i32, i32) {
    %c0_i32 = arith.constant 0 : i32
    %c0_i32_0 = arith.constant 0 : i32
    return %arg0, %c0_i32 : i32, i32
  }
  func.func @transform_7(%arg0: i32) -> (i32, i32) {
    %c0_i32 = arith.constant 0 : i32
    %c0_i32_0 = arith.constant 0 : i32
    return %arg0, %c0_i32 : i32, i32
  }
}

</mosaic_0001>

<bundles_post_ra>
// kernel: tpu_custom_call.1
= control target key start
LH: loop header
LB: loop body
LE: loop exit
PB: predicated region body
PF: predicated region fallthrough
CT: control target
= control target key end

     0   :  { %13 = vsyncpa [#allocation3], 0  ;;  %s1341_s0 = inlined_call_operand.hbm [shape: f32[8,256], index: 0, kind: input, shape index: {}]   ;;  %s1342_s1 = inlined_call_operand.hbm [shape: f32[256,512], index: 1, kind: input, shape index: {}]   ;;  %s1343_s2 = inlined_call_operand.vmem [shape: f32[1,512], index: 2, kind: input, shape index: {}]   ;;  %s1344_s3 = inlined_call_operand.hbm [shape: f32[512,128], index: 3, kind: input, shape index: {}]   ;;  %s1345_s4 = inlined_call_operand.vmem [shape: f32[1,128], index: 4, kind: input, shape index: {}]   ;;  %s1346_s5 = inlined_call_operand.hbm [shape: f32[128,128], index: 5, kind: input, shape index: {}]   ;;  %s1347_s6 = inlined_call_operand.hbm [shape: f32[8,128], index: 6, kind: output, shape index: {0}]   ;;  %s1348_s7 = inlined_call_operand.hbm [shape: f32[8,512], index: 7, kind: output, shape index: {1}]  }
   0x1   :  { %14 = vsyncpa [#allocation6], 0 }
   0x2   :  { %15 = vsyncpa [#allocation9], 0 }
   0x3   :  { %16 = vsyncpa [#allocation4], 0 }
   0x4   :  { %17 = vsyncpa [#allocation12], 0  ;;  %s1210_s24 = smov [#allocation5]   ;;  %s1068_s28 = scalar_lea.hbm %s1342_s1, 16384 }
   0x5   :  { %s33_s25 = sshll.u32 %s1210_s24, 4  ;;  %p1069_p0 = scmp.ne.s32.totalorder %s1342_s1, %s1068_s28  ;;  %s34_s25 = int_to_ptr.vmem [resolvable:$true] %s33_s25 }
   0x6   :  { %p1072_p1 = scmp.lt.u32.totalorder %s1068_s28, %s1342_s1 }
   0x8   :  { %p1074_p2 = pnand %p1072_p1, %p1069_p0 }
   0xa   :  { %1077 = shalt.err (!%p1074_p2)
}
   0xb   :  { %s1078_s10 = scalar_lea.vmem %s34_s25, 16384  ;;  %p1083_p4 = scmp.lt.s32.totalorder %s34_s25, %s34_s25 }
   0xc   :  { %p1079_p3 = scmp.ne.s32.totalorder %s34_s25, %s1078_s10  ;;  %p1084_p5 = scmp.lt.s32.totalorder %s1078_s10, %s1078_s10 }
   0xe   :  { %p1085_p6 = por %p1084_p5, %p1083_p4 }
  0x10   :  { %p1086_p7 = pnand %p1085_p6, %p1079_p3 }
  0x12   :  { %1089 = shalt.err (!%p1086_p7)
}
  0x13   :  { %s1211_s11 = smov 512   ;;  %s1212_s12 = smov 32  }
  0x14   :  { %39 = dma.hbm_to_vmem [thread:$0]  %s1342_s1, 16384, %s34_s25, [#allocation6], %s1211_s11, %s1211_s11, %s1212_s12  }
  0x15   :  { %s1213_s15 = smov [#allocation2]   ;;  %s1214_s17 = smov [#allocation7]  }
  0x16   :  { %s24_s16 = sshll.u32 %s1213_s15, 4  ;;  %s47_s18 = sshll.u32 %s1214_s17, 4  ;;  %s25_s16 = int_to_ptr.vmem [resolvable:$true] %s24_s16  ;;  %s48_s18 = int_to_ptr.vmem [resolvable:$true] %s47_s18 }
  0x17   :  { %s1090_s21 = scalar_lea.hbm %s1341_s0, 256 }
  0x18   :  { %p1091_p8 = scmp.ne.s32.totalorder %s1341_s0, %s1090_s21  ;;  %p1094_p9 = scmp.lt.u32.totalorder %s1090_s21, %s1341_s0 }
  0x1a   :  { %p1096_p10 = pnand %p1094_p9, %p1091_p8 }
  0x1c   :  { %1099 = shalt.err (!%p1096_p10)
}
  0x1d   :  { %s1100_s1 = scalar_lea.vmem %s25_s16, 256  ;;  %p1105_p12 = scmp.lt.s32.totalorder %s25_s16, %s25_s16 }
  0x1e   :  { %p1101_p11 = scmp.ne.s32.totalorder %s25_s16, %s1100_s1  ;;  %p1106_p13 = scmp.lt.s32.totalorder %s1100_s1, %s1100_s1 }
  0x20   :  { %p1107_p0 = por %p1106_p13, %p1105_p12 }
  0x22   :  { %p1108_p1 = pnand %p1107_p0, %p1101_p11 }
  0x24   :  { %1111 = shalt.err (!%p1108_p1)
}
  0x25   :  { %27 = dma.hbm_to_vmem [thread:$0]  %s1341_s0, 256, %s25_s16, [#allocation3]  }
  0x26   :  { %s1112_s30 = scalar_lea.hbm %s1344_s3, 8192 }
  0x27   :  { %p1113_p2 = scmp.ne.s32.totalorder %s1344_s3, %s1112_s30  ;;  %p1116_p3 = scmp.lt.u32.totalorder %s1112_s30, %s1344_s3 }
  0x29   :  { %p1118_p4 = pnand %p1116_p3, %p1113_p2 }
  0x2b   :  { %1121 = shalt.err (!%p1118_p4)
}
  0x2c   :  { %s1122_s12 = scalar_lea.vmem %s48_s18, 8192  ;;  %p1127_p6 = scmp.lt.s32.totalorder %s48_s18, %s48_s18 }
  0x2d   :  { %p1123_p5 = scmp.ne.s32.totalorder %s48_s18, %s1122_s12  ;;  %p1128_p7 = scmp.lt.s32.totalorder %s1122_s12, %s1122_s12 }
  0x2f   :  { %p1129_p8 = por %p1128_p7, %p1127_p6 }
  0x31   :  { %p1130_p9 = pnand %p1129_p8, %p1123_p5 }
  0x33   :  { %1133 = shalt.err (!%p1130_p9)
}
  0x34   :  { %s1215_s0 = smov 128   ;;  %s1216_s13 = smov 8  }
  0x35   :  { %53 = dma.hbm_to_vmem [thread:$0]  %s1344_s3, 8192, %s48_s18, [#allocation6], %s1215_s0, %s1215_s0, %s1216_s13  }
  0x36   :  { %s1217_s16 = smov [#allocation8]   ;;  %s1134_s21 = scalar_lea.hbm %s1346_s5, 2048 }
  0x37   :  { %s61_s17 = sshll.u32 %s1217_s16, 4  ;;  %p1135_p10 = scmp.ne.s32.totalorder %s1346_s5, %s1134_s21  ;;  %s62_s17 = int_to_ptr.vmem [resolvable:$true] %s61_s17 }
  0x38   :  { %p1138_p11 = scmp.lt.u32.totalorder %s1134_s21, %s1346_s5 }
  0x3a   :  { %p1140_p12 = pnand %p1138_p11, %p1135_p10 }
  0x3c   :  { %1143 = shalt.err (!%p1140_p12)
}
  0x3d   :  { %s1144_s1 = scalar_lea.vmem %s62_s17, 2048  ;;  %p1149_p0 = scmp.lt.s32.totalorder %s62_s17, %s62_s17 }
  0x3e   :  { %p1145_p13 = scmp.ne.s32.totalorder %s62_s17, %s1144_s1  ;;  %p1150_p1 = scmp.lt.s32.totalorder %s1144_s1, %s1144_s1 }
  0x40   :  { %p1151_p2 = por %p1150_p1, %p1149_p0 }
  0x42   :  { %p1152_p3 = pnand %p1151_p2, %p1145_p13 }
  0x44   :  { %1155 = shalt.err (!%p1152_p3)
}
  0x45   :  { %67 = dma.hbm_to_vmem [thread:$0]  %s1346_s5, 2048, %s62_s17, [#allocation9], %s1215_s0, %s1215_s0, %s1216_s13  }
  0x46   :  { %1200 = dma.done.wait [#allocation3], 256  }
  0x47   :  { %1201 = vsyncadd [#allocation3], 4294967040 }
  0x48   :  { %1202 = dma.done.wait [#allocation6], 24576  }
  0x49   :  { %1203 = vsyncadd [#allocation6], 4294942720 }
  0x4a   :  { %1204 = dma.done.wait [#allocation9], 2048  }
  0x4b   :  { %1205 = vsyncadd [#allocation9], 4294965248  ;;  %v85_v0 = vld [vmem:[#allocation5 + $0x8] sm:$0xff]  ;;  %v87_v2 = vld [vmem:[#allocation5 + $0x18] sm:$0xff]  ;;  %vm1219_vm0 = vmmov 0   ;;  %s1221_s28 = smov [#allocation11]  }
  0x4c   :  { %v89_v1 = vld [vmem:[#allocation5 + $0x28] sm:$0xff]  ;;  %v91_v4 = vld [vmem:[#allocation5 + $0x38] sm:$0xff]  ;;  %v84_v5 = vld [vmem:[#allocation5] sm:$0xff]  ;;  %s699_s29 = sshll.u32 %s1221_s28, 4  ;;  %s700_s29 = int_to_ptr.vmem [resolvable:$true] %s699_s29 }
  0x4d   :  { %v837_v3 = vpack.c.bf16 %v89_v1, %v85_v0  ;;  %v88_v6 = vld [vmem:[#allocation5 + $0x20] sm:$0xff]  ;;  %v901_v7 = vpack.c.bf16 %v91_v4, %v87_v2  ;;  %v86_v9 = vld [vmem:[#allocation5 + $0x10] sm:$0xff]  ;;  %v93_v11 = vld [vmem:[#allocation5 + $0x48] sm:$0xff]  ;;  %s1156_s30 = scalar_lea.vmem %s700_s29, 512  ;;  %p1161_p5 = scmp.lt.s32.totalorder %s700_s29, %s700_s29 }
  0x4e   :  { %v839_v8 = vpack.c.bf16 %v88_v6, %v84_v5  ;;  %v90_v10 = vld [vmem:[#allocation5 + $0x30] sm:$0xff]  ;;  %v97_v13 = vld [vmem:[#allocation5 + $0x68] sm:$0xff]  ;;  %v95_v14 = vld [vmem:[#allocation5 + $0x58] sm:$0xff]  ;;  %p1157_p4 = scmp.ne.s32.totalorder %s700_s29, %s1156_s30  ;;  %p1162_p6 = scmp.lt.s32.totalorder %s1156_s30, %s1156_s30 }
  0x4f   :  { %838 = vmatprep.subr.bf16.mxu0 %v837_v3  ;;  %v903_v12 = vpack.c.bf16 %v90_v10, %v86_v9  ;;  %v99_v15 = vld [vmem:[#allocation5 + $0x78] sm:$0xff]  ;;  %902 = vmatprep.subr.bf16.mxu1 %v901_v7  ;;  %v841_v16 = vpack.c.bf16 %v97_v13, %v93_v11  ;;  %v92_v18 = vld [vmem:[#allocation5 + $0x40] sm:$0xff]  ;;  %v94_v20 = vld [vmem:[#allocation5 + $0x50] sm:$0xff] }
  0x50   :  { %840 = vmatpush1.bf16.msra.mxu0 %v839_v8  ;;  %v905_v17 = vpack.c.bf16 %v99_v15, %v95_v14  ;;  %v96_v19 = vld [vmem:[#allocation5 + $0x60] sm:$0xff]  ;;  %v98_v22 = vld [vmem:[#allocation5 + $0x70] sm:$0xff]  ;;  %v101_v23 = vld [vmem:[#allocation5 + $0x88] sm:$0xff]  ;;  %p1163_p7 = por %p1162_p6, %p1161_p5 }
  0x51   :  { %904 = vmatpush1.bf16.msra.mxu1 %v903_v12  ;;  %v843_v21 = vpack.c.bf16 %v96_v19, %v92_v18  ;;  %v105_v24 = vld [vmem:[#allocation5 + $0xa8] sm:$0xff]  ;;  %842 = vmatprep.subr.bf16.mxu0 %v841_v16  ;;  %v907_v25 = vpack.c.bf16 %v98_v22, %v94_v20  ;;  %v103_v27 = vld [vmem:[#allocation5 + $0x98] sm:$0xff]  ;;  %v100_v29 = vld [vmem:[#allocation5 + $0x80] sm:$0xff] }
  0x52   :  { %906 = vmatprep.subr.bf16.mxu1 %v905_v17  ;;  %v845_v26 = vpack.c.bf16 %v105_v24, %v101_v23  ;;  %v107_v28 = vld [vmem:[#allocation5 + $0xb8] sm:$0xff]  ;;  %v104_v31 = vld [vmem:[#allocation5 + $0xa0] sm:$0xff]  ;;  %v102_v32 = vld [vmem:[#allocation5 + $0x90] sm:$0xff]  ;;  %p1164_p8 = pnand %p1163_p7, %p1157_p4 }
  0x53   :  { %v909_v30 = vpack.c.bf16 %v107_v28, %v103_v27  ;;  %v106_v33 = vld [vmem:[#allocation5 + $0xb0] sm:$0xff]  ;;  %v847_v34 = vpack.c.bf16 %v104_v31, %v100_v29  ;;  %v109_v35 = vld [vmem:[#allocation5 + $0xc8] sm:$0xff]  ;;  %v111_v37 = vld [vmem:[#allocation5 + $0xd8] sm:$0xff] }
  0x54   :  { %844 = vmatpush1.bf16.msra.mxu0 %v843_v21  ;;  %v113_v36 = vld [vmem:[#allocation5 + $0xe8] sm:$0xff]  ;;  %v911_v38 = vpack.c.bf16 %v106_v33, %v102_v32  ;;  %v115_v40 = vld [vmem:[#allocation5 + $0xf8] sm:$0xff]  ;;  %v108_v41 = vld [vmem:[#allocation5 + $0xc0] sm:$0xff] }
  0x55   :  { %908 = vmatpush1.bf16.msra.mxu1 %v907_v25  ;;  %846 = vmatprep.subr.bf16.mxu0 %v845_v26  ;;  %v849_v39 = vpack.c.bf16 %v113_v36, %v109_v35  ;;  %v112_v42 = vld [vmem:[#allocation5 + $0xe0] sm:$0xff]  ;;  %v913_v43 = vpack.c.bf16 %v115_v40, %v111_v37  ;;  %v110_v44 = vld [vmem:[#allocation5 + $0xd0] sm:$0xff]  ;;  %v117_v46 = vld [vmem:[#allocation5 + $0x108] sm:$0xff] }
  0x56   :  { %910 = vmatprep.subr.bf16.mxu1 %v909_v30  ;;  %v114_v45 = vld [vmem:[#allocation5 + $0xf0] sm:$0xff]  ;;  %v121_v47 = vld [vmem:[#allocation5 + $0x128] sm:$0xff]  ;;  %v119_v48 = vld [vmem:[#allocation5 + $0x118] sm:$0xff]  ;;  %v851_v50 = vpack.c.bf16 %v112_v42, %v108_v41 }
  0x57   :  { %v123_v49 = vld [vmem:[#allocation5 + $0x138] sm:$0xff]  ;;  %v915_v51 = vpack.c.bf16 %v114_v45, %v110_v44  ;;  %v853_v52 = vpack.c.bf16 %v121_v47, %v117_v46  ;;  %v116_v53 = vld [vmem:[#allocation5 + $0x100] sm:$0xff]  ;;  %v118_v55 = vld [vmem:[#allocation5 + $0x110] sm:$0xff] }
  0x58   :  { %848 = vmatpush1.bf16.msra.mxu0 %v847_v34  ;;  %v120_v54 = vld [vmem:[#allocation5 + $0x120] sm:$0xff]  ;;  %v917_v56 = vpack.c.bf16 %v123_v49, %v119_v48  ;;  %v122_v57 = vld [vmem:[#allocation5 + $0x130] sm:$0xff]  ;;  %v125_v58 = vld [vmem:[#allocation5 + $0x148] sm:$0xff] }
  0x59   :  { %912 = vmatpush1.bf16.msra.mxu1 %v911_v38  ;;  %850 = vmatprep.subr.bf16.mxu0 %v849_v39  ;;  %v129_v59 = vld [vmem:[#allocation5 + $0x168] sm:$0xff]  ;;  %v127_v60 = vld [vmem:[#allocation5 + $0x158] sm:$0xff]  ;;  %v855_v62 = vpack.c.bf16 %v120_v54, %v116_v53  ;;  %v919_v63 = vpack.c.bf16 %v122_v57, %v118_v55  ;;  %v124_v1 = vld [vmem:[#allocation5 + $0x140] sm:$0xff] }
  0x5a   :  { %914 = vmatprep.subr.bf16.mxu1 %v913_v43  ;;  %v131_v61 = vld [vmem:[#allocation5 + $0x178] sm:$0xff]  ;;  %v857_v0 = vpack.c.bf16 %v129_v59, %v125_v58  ;;  %v128_v2 = vld [vmem:[#allocation5 + $0x160] sm:$0xff]  ;;  %v126_v3 = vld [vmem:[#allocation5 + $0x150] sm:$0xff] }
  0x5b   :  { %v921_v4 = vpack.c.bf16 %v131_v61, %v127_v60  ;;  %v130_v5 = vld [vmem:[#allocation5 + $0x170] sm:$0xff]  ;;  %v133_v6 = vld [vmem:[#allocation5 + $0x188] sm:$0xff]  ;;  %v135_v8 = vld [vmem:[#allocation5 + $0x198] sm:$0xff]  ;;  %v859_v10 = vpack.c.bf16 %v128_v2, %v124_v1 }
  0x5c   :  { %852 = vmatpush1.bf16.msra.mxu0 %v851_v50  ;;  %v137_v7 = vld [vmem:[#allocation5 + $0x1a8] sm:$0xff]  ;;  %v139_v9 = vld [vmem:[#allocation5 + $0x1b8] sm:$0xff]  ;;  %v923_v11 = vpack.c.bf16 %v130_v5, %v126_v3  ;;  %v132_v13 = vld [vmem:[#allocation5 + $0x180] sm:$0xff] }
  0x5d   :  { %916 = vmatpush1.bf16.msra.mxu1 %v915_v51  ;;  %854 = vmatprep.subr.bf16.mxu0 %v853_v52  ;;  %v861_v12 = vpack.c.bf16 %v137_v7, %v133_v6  ;;  %v136_v14 = vld [vmem:[#allocation5 + $0x1a0] sm:$0xff]  ;;  %v134_v15 = vld [vmem:[#allocation5 + $0x190] sm:$0xff]  ;;  %v925_v16 = vpack.c.bf16 %v139_v9, %v135_v8  ;;  %v141_v18 = vld [vmem:[#allocation5 + $0x1c8] sm:$0xff] }
  0x5e   :  { %918 = vmatprep.subr.bf16.mxu1 %v917_v56  ;;  %v138_v17 = vld [vmem:[#allocation5 + $0x1b0] sm:$0xff]  ;;  %v145_v19 = vld [vmem:[#allocation5 + $0x1e8] sm:$0xff]  ;;  %v143_v20 = vld [vmem:[#allocation5 + $0x1d8] sm:$0xff]  ;;  %v863_v22 = vpack.c.bf16 %v136_v14, %v132_v13 }
  0x5f   :  { %v147_v21 = vld [vmem:[#allocation5 + $0x1f8] sm:$0xff]  ;;  %v927_v23 = vpack.c.bf16 %v138_v17, %v134_v15  ;;  %v865_v24 = vpack.c.bf16 %v145_v19, %v141_v18  ;;  %v140_v25 = vld [vmem:[#allocation5 + $0x1c0] sm:$0xff]  ;;  %v142_v27 = vld [vmem:[#allocation5 + $0x1d0] sm:$0xff] }
  0x60   :  { %856 = vmatpush1.bf16.msra.mxu0 %v855_v62  ;;  %v144_v26 = vld [vmem:[#allocation5 + $0x1e0] sm:$0xff]  ;;  %v929_v28 = vpack.c.bf16 %v147_v21, %v143_v20  ;;  %v146_v29 = vld [vmem:[#allocation5 + $0x1f0] sm:$0xff]  ;;  %v149_v30 = vld [vmem:[#allocation5 + $0x208] sm:$0xff] }
  0x61   :  { %920 = vmatpush1.bf16.msra.mxu1 %v919_v63  ;;  %858 = vmatprep.subr.bf16.mxu0 %v857_v0  ;;  %v153_v31 = vld [vmem:[#allocation5 + $0x228] sm:$0xff]  ;;  %v151_v32 = vld [vmem:[#allocation5 + $0x218] sm:$0xff]  ;;  %v867_v34 = vpack.c.bf16 %v144_v26, %v140_v25  ;;  %v931_v35 = vpack.c.bf16 %v146_v29, %v142_v27  ;;  %v148_v37 = vld [vmem:[#allocation5 + $0x200] sm:$0xff] }
  0x62   :  { %922 = vmatprep.subr.bf16.mxu1 %v921_v4  ;;  %v155_v33 = vld [vmem:[#allocation5 + $0x238] sm:$0xff]  ;;  %v869_v36 = vpack.c.bf16 %v153_v31, %v149_v30  ;;  %v152_v38 = vld [vmem:[#allocation5 + $0x220] sm:$0xff]  ;;  %v150_v39 = vld [vmem:[#allocation5 + $0x210] sm:$0xff] }
  0x63   :  { %v933_v40 = vpack.c.bf16 %v155_v33, %v151_v32  ;;  %v154_v41 = vld [vmem:[#allocation5 + $0x230] sm:$0xff]  ;;  %v157_v42 = vld [vmem:[#allocation5 + $0x248] sm:$0xff]  ;;  %v159_v44 = vld [vmem:[#allocation5 + $0x258] sm:$0xff]  ;;  %v871_v46 = vpack.c.bf16 %v152_v38, %v148_v37 }
  0x64   :  { %860 = vmatpush1.bf16.msra.mxu0 %v859_v10  ;;  %v161_v43 = vld [vmem:[#allocation5 + $0x268] sm:$0xff]  ;;  %v163_v45 = vld [vmem:[#allocation5 + $0x278] sm:$0xff]  ;;  %v935_v47 = vpack.c.bf16 %v154_v41, %v150_v39  ;;  %v156_v49 = vld [vmem:[#allocation5 + $0x240] sm:$0xff] }
  0x65   :  { %924 = vmatpush1.bf16.msra.mxu1 %v923_v11  ;;  %862 = vmatprep.subr.bf16.mxu0 %v861_v12  ;;  %v873_v48 = vpack.c.bf16 %v161_v43, %v157_v42  ;;  %v160_v50 = vld [vmem:[#allocation5 + $0x260] sm:$0xff]  ;;  %v158_v51 = vld [vmem:[#allocation5 + $0x250] sm:$0xff]  ;;  %v937_v52 = vpack.c.bf16 %v163_v45, %v159_v44  ;;  %v165_v54 = vld [vmem:[#allocation5 + $0x288] sm:$0xff] }
  0x66   :  { %926 = vmatprep.subr.bf16.mxu1 %v925_v16  ;;  %v162_v53 = vld [vmem:[#allocation5 + $0x270] sm:$0xff]  ;;  %v169_v55 = vld [vmem:[#allocation5 + $0x2a8] sm:$0xff]  ;;  %v167_v56 = vld [vmem:[#allocation5 + $0x298] sm:$0xff]  ;;  %v875_v58 = vpack.c.bf16 %v160_v50, %v156_v49 }
  0x67   :  { %v171_v57 = vld [vmem:[#allocation5 + $0x2b8] sm:$0xff]  ;;  %v939_v59 = vpack.c.bf16 %v162_v53, %v158_v51  ;;  %v877_v60 = vpack.c.bf16 %v169_v55, %v165_v54  ;;  %v164_v61 = vld [vmem:[#allocation5 + $0x280] sm:$0xff]  ;;  %v166_v63 = vld [vmem:[#allocation5 + $0x290] sm:$0xff] }
  0x68   :  { %864 = vmatpush1.bf16.msra.mxu0 %v863_v22  ;;  %v168_v62 = vld [vmem:[#allocation5 + $0x2a0] sm:$0xff]  ;;  %v941_v0 = vpack.c.bf16 %v171_v57, %v167_v56  ;;  %v170_v1 = vld [vmem:[#allocation5 + $0x2b0] sm:$0xff]  ;;  %v173_v2 = vld [vmem:[#allocation5 + $0x2c8] sm:$0xff] }
  0x69   :  { %928 = vmatpush1.bf16.msra.mxu1 %v927_v23  ;;  %866 = vmatprep.subr.bf16.mxu0 %v865_v24  ;;  %v177_v3 = vld [vmem:[#allocation5 + $0x2e8] sm:$0xff]  ;;  %v175_v4 = vld [vmem:[#allocation5 + $0x2d8] sm:$0xff]  ;;  %v879_v6 = vpack.c.bf16 %v168_v62, %v164_v61  ;;  %v172_v7 = vld [vmem:[#allocation5 + $0x2c0] sm:$0xff]  ;;  %v943_v8 = vpack.c.bf16 %v170_v1, %v166_v63 }
  0x6a   :  { %930 = vmatprep.subr.bf16.mxu1 %v929_v28  ;;  %v179_v5 = vld [vmem:[#allocation5 + $0x2f8] sm:$0xff]  ;;  %v881_v9 = vpack.c.bf16 %v177_v3, %v173_v2  ;;  %v176_v10 = vld [vmem:[#allocation5 + $0x2e0] sm:$0xff]  ;;  %v174_v11 = vld [vmem:[#allocation5 + $0x2d0] sm:$0xff] }
  0x6b   :  { %v178_v12 = vld [vmem:[#allocation5 + $0x2f0] sm:$0xff]  ;;  %v945_v13 = vpack.c.bf16 %v179_v5, %v175_v4  ;;  %v181_v14 = vld [vmem:[#allocation5 + $0x308] sm:$0xff]  ;;  %v81_v16 = vld [vmem:[#allocation2 + $0x8] sm:$0xff]  ;;  %v883_v20 = vpack.c.bf16 %v176_v10, %v172_v7 }
  0x6c   :  { %868 = vmatpush1.bf16.msra.mxu0 %v867_v34  ;;  %v185_v15 = vld [vmem:[#allocation5 + $0x328] sm:$0xff]  ;;  %v183_v17 = vld [vmem:[#allocation5 + $0x318] sm:$0xff]  ;;  %v83_v19 = vmax.f32 %v81_v16, 0.0  ;;  %v947_v21 = vpack.c.bf16 %v178_v12, %v174_v11  ;;  %v180_v23 = vld [vmem:[#allocation5 + $0x300] sm:$0xff] }
  0x6d   :  { %932 = vmatpush1.bf16.msra.mxu1 %v931_v35  ;;  %870 = vmatprep.subr.bf16.mxu0 %v869_v36  ;;  %v187_v18 = vld [vmem:[#allocation5 + $0x338] sm:$0xff]  ;;  %v885_v22 = vpack.c.bf16 %v185_v15, %v181_v14  ;;  %v184_v24 = vld [vmem:[#allocation5 + $0x320] sm:$0xff]  ;;  %v182_v25 = vld [vmem:[#allocation5 + $0x310] sm:$0xff] }
  0x6e   :  { %934 = vmatprep.subr.bf16.mxu1 %v933_v40  ;;  %v949_v26 = vpack.c.bf16 %v187_v18, %v183_v17  ;;  %v186_v27 = vld [vmem:[#allocation5 + $0x330] sm:$0xff]  ;;  %v189_v28 = vld [vmem:[#allocation5 + $0x348] sm:$0xff]  ;;  %298 = vmatprep.mubr.f32.mxu0 %v83_v19  ;;  %v191_v30 = vld [vmem:[#allocation5 + $0x358] sm:$0xff]  ;;  %v887_v32 = vpack.c.bf16 %v184_v24, %v180_v23 }
  0x6f   :  { %v193_v29 = vld [vmem:[#allocation5 + $0x368] sm:$0xff]  ;;  %v195_v31 = vld [vmem:[#allocation5 + $0x378] sm:$0xff]  ;;  %369 = vmatprep.mubr.f32.mxu1 %v83_v19  ;;  %v951_v33 = vpack.c.bf16 %v186_v27, %v182_v25  ;;  %v188_v35 = vld [vmem:[#allocation5 + $0x340] sm:$0xff] }
  0x70   :  { %872 = vmatpush1.bf16.msra.mxu0 %v871_v46  ;;  %v889_v34 = vpack.c.bf16 %v193_v29, %v189_v28  ;;  %v192_v36 = vld [vmem:[#allocation5 + $0x360] sm:$0xff]  ;;  %v190_v37 = vld [vmem:[#allocation5 + $0x350] sm:$0xff]  ;;  %v953_v38 = vpack.c.bf16 %v195_v31, %v191_v30  ;;  %v197_v40 = vld [vmem:[#allocation5 + $0x388] sm:$0xff] }
  0x71   :  { %936 = vmatpush1.bf16.msra.mxu1 %v935_v47  ;;  %874 = vmatprep.subr.bf16.mxu0 %v873_v48  ;;  %v194_v39 = vld [vmem:[#allocation5 + $0x370] sm:$0xff]  ;;  %v201_v41 = vld [vmem:[#allocation5 + $0x3a8] sm:$0xff]  ;;  %v199_v42 = vld [vmem:[#allocation5 + $0x398] sm:$0xff]  ;;  %v891_v44 = vpack.c.bf16 %v192_v36, %v188_v35 }
  0x72   :  { %938 = vmatprep.subr.bf16.mxu1 %v937_v52  ;;  %v203_v43 = vld [vmem:[#allocation5 + $0x3b8] sm:$0xff]  ;;  %v955_v45 = vpack.c.bf16 %v194_v39, %v190_v37  ;;  %v893_v46 = vpack.c.bf16 %v201_v41, %v197_v40  ;;  %v196_v47 = vld [vmem:[#allocation5 + $0x380] sm:$0xff]  ;;  %v198_v49 = vld [vmem:[#allocation5 + $0x390] sm:$0xff] }
  0x73   :  { %v200_v48 = vld [vmem:[#allocation5 + $0x3a0] sm:$0xff]  ;;  %v957_v50 = vpack.c.bf16 %v203_v43, %v199_v42  ;;  %v202_v51 = vld [vmem:[#allocation5 + $0x3b0] sm:$0xff]  ;;  %v205_v52 = vld [vmem:[#allocation5 + $0x3c8] sm:$0xff] }
  0x74   :  { %876 = vmatpush1.bf16.msra.mxu0 %v875_v58  ;;  %v209_v53 = vld [vmem:[#allocation5 + $0x3e8] sm:$0xff]  ;;  %v207_v54 = vld [vmem:[#allocation5 + $0x3d8] sm:$0xff]  ;;  %v895_v56 = vpack.c.bf16 %v200_v48, %v196_v47  ;;  %v959_v57 = vpack.c.bf16 %v202_v51, %v198_v49  ;;  %v206_v61 = vld [vmem:[#allocation5 + $0x3d0] sm:$0xff] }
  0x75   :  { %940 = vmatpush1.bf16.msra.mxu1 %v939_v59  ;;  %878 = vmatprep.subr.bf16.mxu0 %v877_v60  ;;  %v211_v55 = vld [vmem:[#allocation5 + $0x3f8] sm:$0xff]  ;;  %v897_v58 = vpack.c.bf16 %v209_v53, %v205_v52  ;;  %v204_v59 = vld [vmem:[#allocation5 + $0x3c0] sm:$0xff]  ;;  %v210_v63 = vld [vmem:[#allocation5 + $0x3f0] sm:$0xff] }
  0x76   :  { %942 = vmatprep.subr.bf16.mxu1 %v941_v0  ;;  %v208_v60 = vld [vmem:[#allocation5 + $0x3e0] sm:$0xff]  ;;  %v961_v62 = vpack.c.bf16 %v211_v55, %v207_v54  ;;  %v397_v1 = vld [vmem:[#allocation7 + $0x88] sm:$0xff]  ;;  %v80_v5 = vld [vmem:[#allocation2] sm:$0xff] }
  0x77   :  { %v396_v0 = vld [vmem:[#allocation7 + $0x80] sm:$0xff]  ;;  %v429_v3 = vld [vmem:[#allocation7 + $0x188] sm:$0xff]  ;;  %v899_v4 = vpack.c.bf16 %v208_v60, %v204_v59  ;;  %v399_v14 = vld [vmem:[#allocation7 + $0x98] sm:$0xff]  ;;  %v82_v15 = vmax.f32 %v80_v5, 0.0 }
  0x78   :  { %880 = vmatpush1.bf16.msra.mxu0 %v879_v6  ;;  %v428_v2 = vld [vmem:[#allocation7 + $0x180] sm:$0xff]  ;;  %v963_v6 = vpack.c.bf16 %v210_v63, %v206_v61  ;;  %v965_v7 = vpack.c.bf16 %v397_v1, %v396_v0  ;;  %v413_v12 = vld [vmem:[#allocation7 + $0x108] sm:$0xff]  ;;  %v430_v16 = vld [vmem:[#allocation7 + $0x190] sm:$0xff] }
  0x79   :  { %944 = vmatpush1.bf16.msra.mxu1 %v943_v8  ;;  %882 = vmatprep.subr.bf16.mxu0 %v881_v9  ;;  %v380_v8 = vld [vmem:[#allocation7] sm:$0xff]  ;;  %v381_v9 = vld [vmem:[#allocation7 + $0x8] sm:$0xff]  ;;  %v997_v11 = vpack.c.bf16 %v429_v3, %v428_v2  ;;  %v431_v17 = vld [vmem:[#allocation7 + $0x198] sm:$0xff] }
  0x7a   :  { %946 = vmatprep.subr.bf16.mxu1 %v945_v13  ;;  %v412_v10 = vld [vmem:[#allocation7 + $0x100] sm:$0xff]  ;;  %v398_v13 = vld [vmem:[#allocation7 + $0x90] sm:$0xff]  ;;  %v967_v18 = vpack.c.bf16 %v381_v9, %v380_v8  ;;  %v1001_v24 = vpack.c.bf16 %v431_v17, %v430_v16  ;;  %v415_v25 = vld [vmem:[#allocation7 + $0x118] sm:$0xff] }
  0x7b   :  { %v999_v19 = vpack.c.bf16 %v413_v12, %v412_v10  ;;  %v414_v23 = vld [vmem:[#allocation7 + $0x110] sm:$0xff]  ;;  %v401_v27 = vld [vmem:[#allocation7 + $0xa8] sm:$0xff]  ;;  %v432_v28 = vld [vmem:[#allocation7 + $0x1a0] sm:$0xff] }
  0x7c   :  { %884 = vmatpush1.bf16.msra.mxu0 %v883_v20  ;;  %v969_v20 = vpack.c.bf16 %v399_v14, %v398_v13  ;;  %v433_v29 = vld [vmem:[#allocation7 + $0x1a8] sm:$0xff]  ;;  %v1003_v31 = vpack.c.bf16 %v415_v25, %v414_v23  ;;  %v416_v35 = vld [vmem:[#allocation7 + $0x120] sm:$0xff]  ;;  %v403_v39 = vld [vmem:[#allocation7 + $0xb8] sm:$0xff] }
  0x7d   :  { %948 = vmatpush1.bf16.msra.mxu1 %v947_v21  ;;  %886 = vmatprep.subr.bf16.mxu0 %v885_v22  ;;  %v382_v21 = vld [vmem:[#allocation7 + $0x10] sm:$0xff]  ;;  %v383_v22 = vld [vmem:[#allocation7 + $0x18] sm:$0xff]  ;;  %v1005_v36 = vpack.c.bf16 %v433_v29, %v432_v28  ;;  %v417_v37 = vld [vmem:[#allocation7 + $0x128] sm:$0xff] }
  0x7e   :  { %950 = vmatprep.subr.bf16.mxu1 %v949_v26  ;;  %v400_v26 = vld [vmem:[#allocation7 + $0xa0] sm:$0xff]  ;;  %v971_v30 = vpack.c.bf16 %v383_v22, %v382_v21  ;;  %v434_v40 = vld [vmem:[#allocation7 + $0x1b0] sm:$0xff]  ;;  %v435_v41 = vld [vmem:[#allocation7 + $0x1b8] sm:$0xff]  ;;  %v1007_v43 = vpack.c.bf16 %v417_v37, %v416_v35  ;;  %v214_v37 = vlaneseq }
  0x7f   :  { %v418_v47 = vld [vmem:[#allocation7 + $0x130] sm:$0xff]  ;;  %v1009_v48 = vpack.c.bf16 %v435_v41, %v434_v40  ;;  %v419_v49 = vld [vmem:[#allocation7 + $0x138] sm:$0xff]  ;;  %v405_v51 = vld [vmem:[#allocation7 + $0xc8] sm:$0xff] }
  0x80   :  { %888 = vmatpush1.bf16.msra.mxu0 %v887_v32  ;;  %v973_v32 = vpack.c.bf16 %v401_v27, %v400_v26  ;;  %v436_v52 = vld [vmem:[#allocation7 + $0x1c0] sm:$0xff]  ;;  %v437_v53 = vld [vmem:[#allocation7 + $0x1c8] sm:$0xff]  ;;  %v1011_v55 = vpack.c.bf16 %v419_v49, %v418_v47  ;;  %v407_v63 = vld [vmem:[#allocation7 + $0xd8] sm:$0xff] }
  0x81   :  { %952 = vmatpush1.bf16.msra.mxu1 %v951_v33  ;;  %890 = vmatprep.subr.bf16.mxu0 %v889_v34  ;;  %v384_v33 = vld [vmem:[#allocation7 + $0x20] sm:$0xff]  ;;  %v385_v34 = vld [vmem:[#allocation7 + $0x28] sm:$0xff]  ;;  %v1013_v60 = vpack.c.bf16 %v437_v53, %v436_v52  ;;  %v438_v0 = vld [vmem:[#allocation7 + $0x1d0] sm:$0xff] }
  0x82   :  { %954 = vmatprep.subr.bf16.mxu1 %v953_v38  ;;  %v402_v38 = vld [vmem:[#allocation7 + $0xb0] sm:$0xff]  ;;  %v975_v42 = vpack.c.bf16 %v385_v34, %v384_v33  ;;  %v420_v59 = vld [vmem:[#allocation7 + $0x140] sm:$0xff]  ;;  %v421_v61 = vld [vmem:[#allocation7 + $0x148] sm:$0xff] }
  0x83   :  { %v439_v1 = vld [vmem:[#allocation7 + $0x1d8] sm:$0xff]  ;;  %v1015_v3 = vpack.c.bf16 %v421_v61, %v420_v59  ;;  %v390_v5 = vld [vmem:[#allocation7 + $0x50] sm:$0xff]  ;;  %v408_v10 = vld [vmem:[#allocation7 + $0xe0] sm:$0xff] }
  0x84   :  { %892 = vmatpush1.bf16.msra.mxu0 %v891_v44  ;;  %v977_v44 = vpack.c.bf16 %v403_v39, %v402_v38  ;;  %v1017_v8 = vpack.c.bf16 %v439_v1, %v438_v0  ;;  %v423_v9 = vld [vmem:[#allocation7 + $0x158] sm:$0xff]  ;;  %v440_v12 = vld [vmem:[#allocation7 + $0x1e0] sm:$0xff]  ;;  %v441_v13 = vld [vmem:[#allocation7 + $0x1e8] sm:$0xff]  ;;  %v215_v38 = vshrl.u32 %v214_v37, 7 }
  0x85   :  { %956 = vmatpush1.bf16.msra.mxu1 %v955_v45  ;;  %894 = vmatprep.subr.bf16.mxu0 %v893_v46  ;;  %v386_v45 = vld [vmem:[#allocation7 + $0x30] sm:$0xff]  ;;  %v387_v46 = vld [vmem:[#allocation7 + $0x38] sm:$0xff]  ;;  %v392_v17 = vld [vmem:[#allocation7 + $0x60] sm:$0xff] }
  0x86   :  { %958 = vmatprep.subr.bf16.mxu1 %v957_v50  ;;  %v404_v50 = vld [vmem:[#allocation7 + $0xc0] sm:$0xff]  ;;  %v979_v54 = vpack.c.bf16 %v387_v46, %v386_v45  ;;  %v425_v21 = vld [vmem:[#allocation7 + $0x168] sm:$0xff]  ;;  %v411_v25 = vld [vmem:[#allocation7 + $0xf8] sm:$0xff]  ;;  %v216_v39 = vsub.s32 0, %v215_v38  ;;  %v224_v41 = vsub.s32 2, %v215_v38 }
  0x87   :  { %v442_v26 = vld [vmem:[#allocation7 + $0x1f0] sm:$0xff]  ;;  %v443_v28 = vld [vmem:[#allocation7 + $0x1f8] sm:$0xff]  ;;  %v594_v49 = vld [vmem:[#allocation8 + $0x8] sm:$0xff] }
  0x88   :  { %896 = vmatpush1.bf16.msra.mxu0 %v895_v56  ;;  %v981_v56 = vpack.c.bf16 %v405_v51, %v404_v50  ;;  %v394_v29 = vld [vmem:[#allocation7 + $0x70] sm:$0xff]  ;;  %v427_v34 = vld [vmem:[#allocation7 + $0x178] sm:$0xff] }
  0x89   :  { %960 = vmatpush1.bf16.msra.mxu1 %v959_v57  ;;  %898 = vmatprep.subr.bf16.mxu0 %v897_v58  ;;  %v388_v57 = vld [vmem:[#allocation7 + $0x40] sm:$0xff]  ;;  %v389_v58 = vld [vmem:[#allocation7 + $0x48] sm:$0xff]  ;;  %v426_v33 = vld [vmem:[#allocation7 + $0x170] sm:$0xff] }
  0x8a   :  { %962 = vmatprep.subr.bf16.mxu1 %v961_v62  ;;  %v406_v62 = vld [vmem:[#allocation7 + $0xd0] sm:$0xff]  ;;  %v983_v2 = vpack.c.bf16 %v389_v58, %v388_v57  ;;  %v1027_v35 = vpack.c.bf16 %v427_v34, %v426_v33 }
  0x8b   :  { %v212_v40 = vld [vmem:[%s1343_s2] sm:$0xf] }
  0x8c   :  { %900 = vmatpush1.bf16.msra.mxu0 %v899_v4  ;;  %v985_v4 = vpack.c.bf16 %v407_v63, %v406_v62  ;;  %v225_v45 = vrot.slane %v212_v40, %v224_v41  ;;  %v595_v59 = vld [vmem:[#allocation8 + $0x10] sm:$0xff]  ;;  %v597_v62 = vld [vmem:[#allocation8 + $0x20] sm:$0xff]  ;;  %v598_v63 = vld [vmem:[#allocation8 + $0x28] sm:$0xff] }
  0x8d   :  { %964 = vmatpush1.bf16.msra.mxu1 %v963_v6  ;;  %966 = vmatprep.subr.bf16.mxu0 %v965_v7  ;;  %v391_v6 = vld [vmem:[#allocation7 + $0x58] sm:$0xff]  ;;  %v422_v7 = vld [vmem:[#allocation7 + $0x150] sm:$0xff]  ;;  %v1036_v0 = vpack.c.bf16 %v598_v63, %v597_v62 }
  0x8e   :  { %998 = vmatprep.subr.bf16.mxu1 %v997_v11  ;;  %v409_v11 = vld [vmem:[#allocation7 + $0xe8] sm:$0xff]  ;;  %v987_v14 = vpack.c.bf16 %v391_v6, %v390_v5  ;;  %v599_v1 = vld [vmem:[#allocation8 + $0x30] sm:$0xff] }
  0x8f   :  { %299 = vmatmul.mubr.f32.vlgmr.msra.gmra.mrb[0].mxu0 %v82_v15  ;;  %v989_v16 = vpack.c.bf16 %v409_v11, %v408_v10  ;;  %v602_v5 = vld [vmem:[#allocation8 + $0x48] sm:$0xff]  ;;  %v605_v10 = vld [vmem:[#allocation8 + $0x60] sm:$0xff] }
  0x90   :  { %370 = vmatmul.mubr.f32.vlgmr.msra.gmra.mrb[0].mxu1 %v82_v15  ;;  %968 = vmatpush3.bf16.msra.mxu0 %v967_v18  ;;  %v1019_v15 = vpack.c.bf16 %v423_v9, %v422_v7  ;;  %v393_v18 = vld [vmem:[#allocation7 + $0x68] sm:$0xff]  ;;  %v603_v7 = vld [vmem:[#allocation8 + $0x50] sm:$0xff] }
  0x91   :  { %1000 = vmatpush3.bf16.msra.mxu1 %v999_v19  ;;  %970 = vmatprep.subr.bf16.mxu0 %v969_v20  ;;  %v1021_v19 = vpack.c.bf16 %v441_v13, %v440_v12  ;;  %v424_v20 = vld [vmem:[#allocation7 + $0x160] sm:$0xff]  ;;  %v991_v22 = vpack.c.bf16 %v393_v18, %v392_v17  ;;  %v606_v11 = vld [vmem:[#allocation8 + $0x68] sm:$0xff]  ;;  %v607_v13 = vld [vmem:[#allocation8 + $0x70] sm:$0xff] }
  0x92   :  { %1002 = vmatprep.subr.bf16.mxu1 %v1001_v24  ;;  %v1023_v23 = vpack.c.bf16 %v425_v21, %v424_v20  ;;  %v410_v24 = vld [vmem:[#allocation7 + $0xf0] sm:$0xff]  ;;  %v1048_v12 = vpack.c.bf16 %v606_v11, %v605_v10 }
  0x93   :  { %v993_v27 = vpack.c.bf16 %v411_v25, %v410_v24 }
  0x94   :  { %972 = vmatpush3.bf16.msra.mxu0 %v971_v30  ;;  %v395_v30 = vld [vmem:[#allocation7 + $0x78] sm:$0xff] }
  0x95   :  { %1004 = vmatpush3.bf16.msra.mxu1 %v1003_v31  ;;  %974 = vmatprep.subr.bf16.mxu0 %v973_v32  ;;  %v1025_v31 = vpack.c.bf16 %v443_v28, %v442_v26  ;;  %v995_v32 = vpack.c.bf16 %v395_v30, %v394_v29 }
  0x96   :  { %1006 = vmatprep.subr.bf16.mxu1 %v1005_v36  ;;  %v1218_v36 = vmov 0.0|0.0  }
  0x98   :  { %976 = vmatpush3.bf16.msra.mxu0 %v975_v42  ;;  %v220_v42 = vsub.s32 1, %v215_v38 }
  0x99   :  { %1008 = vmatpush3.bf16.msra.mxu1 %v1007_v43  ;;  %978 = vmatprep.subr.bf16.mxu0 %v977_v44  ;;  %v228_v43 = vsub.s32 3, %v215_v38  ;;  %v217_v44 = vrot.slane %v212_v40, %v216_v39 }
  0x9a   :  { %1010 = vmatprep.subr.bf16.mxu1 %v1009_v48  ;;  %v221_v46 = vrot.slane %v212_v40, %v220_v42  ;;  %v593_v48 = vld [vmem:[#allocation8] sm:$0xff] }
  0x9b   :  { %v229_v47 = vrot.slane %v212_v40, %v228_v43  ;;  %v1030_v57 = vpack.c.bf16 %v594_v49, %v593_v48 }
  0x9c   :  { %980 = vmatpush3.bf16.msra.mxu0 %v979_v54 }
  0x9d   :  { %1012 = vmatpush3.bf16.msra.mxu1 %v1011_v55  ;;  %982 = vmatprep.subr.bf16.mxu0 %v981_v56 }
  0x9e   :  { %1014 = vmatprep.subr.bf16.mxu1 %v1013_v60  ;;  %v596_v60 = vld [vmem:[#allocation8 + $0x18] sm:$0xff] }
  0x9f   :  { %v1033_v61 = vpack.c.bf16 %v596_v60, %v595_v59 }
  0xa0   :  { %984 = vmatpush3.bf16.msra.mxu0 %v983_v2  ;;  %v600_v2 = vld [vmem:[#allocation8 + $0x38] sm:$0xff] }
  0xa1   :  { %1016 = vmatpush3.bf16.msra.mxu1 %v1015_v3  ;;  %986 = vmatprep.subr.bf16.mxu0 %v985_v4  ;;  %v1039_v3 = vpack.c.bf16 %v600_v2, %v599_v1  ;;  %v601_v4 = vld [vmem:[#allocation8 + $0x40] sm:$0xff] }
  0xa2   :  { %1018 = vmatprep.subr.bf16.mxu1 %v1017_v8  ;;  %v1042_v6 = vpack.c.bf16 %v602_v5, %v601_v4  ;;  %v604_v8 = vld [vmem:[#allocation8 + $0x58] sm:$0xff] }
  0xa3   :  { %v1045_v9 = vpack.c.bf16 %v604_v8, %v603_v7 }
  0xa4   :  { %988 = vmatpush3.bf16.msra.mxu0 %v987_v14  ;;  %v608_v14 = vld [vmem:[#allocation8 + $0x78] sm:$0xff] }
  0xa5   :  { %1020 = vmatpush3.bf16.msra.mxu1 %v1019_v15  ;;  %990 = vmatprep.subr.bf16.mxu0 %v989_v16  ;;  %v1051_v15 = vpack.c.bf16 %v608_v14, %v607_v13  ;;  %v1220_v16 = vmov 0.0  }
  0xa6   :  { %1022 = vmatprep.subr.bf16.mxu1 %v1021_v19  ;;  %v714_v19 = vld [vmem:[%s1345_s4] ss:$0 sm:$0xff] }
  0xa8   :  { %992 = vmatpush3.bf16.msra.mxu0 %v991_v22 }
  0xa9   :  { %1024 = vmatpush3.bf16.msra.mxu1 %v1023_v23  ;;  %994 = vmatprep.subr.bf16.mxu0 %v993_v27 }
  0xaa   :  { %1026 = vmatprep.subr.bf16.mxu1 %v1025_v31 }
  0xac   :  { %996 = vmatpush3.bf16.msra.mxu0 %v995_v32 }
  0xad   :  { %1028 = vmatpush3.bf16.msra.mxu1 %v1027_v35  ;;  %1029 = vmatprep.subr.bf16.mxu0 %v1218_v36 }
 0x162   :  { %v300_v50 = vpop.f32.mrb[0].mxu0 }
 0x163   :  { %v301_v51 = vadd.f32 %v300_v50, %v217_v44  ;;  %v371_v52 = vpop.f32.mrb[0].mxu1  ;;  %v302_v53 = vpop.f32.mrb[1].mxu0 }
 0x164   :  { %v372_v54 = vadd.f32 %v371_v52, %v225_v45  ;;  %v303_v55 = vadd.f32 %v302_v53, %v221_v46  ;;  %v373_v56 = vpop.f32.mrb[1].mxu1 }
 0x165   :  { %376 = vst [vmem:[#allocation11] sm:$0xff] %v301_v51  ;;  %v374_v58 = vadd.f32 %v373_v56, %v229_v47 }
 0x166   :  { %378 = vst [vmem:[#allocation11 + $0x10] sm:$0xff] %v372_v54  ;;  %377 = vst [vmem:[#allocation11 + $0x8] sm:$0xff] %v303_v55  ;;  %515 = vmatprep.mubr.f32.mxu0 %v303_v55 }
 0x167   :  { %379 = vst [vmem:[#allocation11 + $0x18] sm:$0xff] %v374_v58  ;;  %585 = vmatprep.mubr.f32.mxu1 %v374_v58  ;;  %516 = vmatmul.mubr.f32.vlgmr.msra.gmra.mrb[2].mxu0 %v301_v51 }
 0x168   :  { %586 = vmatmul.mubr.f32.vlgmr.msra.gmra.mrb[2].mxu1 %v372_v54  ;;  %1031 = vmatpush3.bf16.msra.mxu0 %v1030_v57 }
 0x169   :  { %1032 = vmatprep.subr.bf16.mxu0 %v1218_v36  ;;  %834 = vmatprep.mubr.msk.f32.mxu0 %vm1219_vm0, %v1220_v16 }
 0x16c   :  { %1034 = vmatpush3.bf16.msra.mxu0 %v1033_v61 }
 0x16d   :  { %1035 = vmatprep.subr.bf16.mxu0 %v1218_v36 }
 0x170   :  { %1037 = vmatpush3.bf16.msra.mxu0 %v1036_v0 }
 0x171   :  { %1038 = vmatprep.subr.bf16.mxu0 %v1218_v36 }
 0x174   :  { %1040 = vmatpush3.bf16.msra.mxu0 %v1039_v3 }
 0x175   :  { %1041 = vmatprep.subr.bf16.mxu0 %v1218_v36 }
 0x178   :  { %1043 = vmatpush3.bf16.msra.mxu0 %v1042_v6 }
 0x179   :  { %1044 = vmatprep.subr.bf16.mxu0 %v1218_v36 }
 0x17c   :  { %1046 = vmatpush3.bf16.msra.mxu0 %v1045_v9 }
 0x17d   :  { %1047 = vmatprep.subr.bf16.mxu0 %v1218_v36 }
 0x180   :  { %1049 = vmatpush3.bf16.msra.mxu0 %v1048_v12 }
 0x181   :  { %1050 = vmatprep.subr.bf16.mxu0 %v1218_v36 }
 0x184   :  { %1052 = vmatpush3.bf16.msra.mxu0 %v1051_v15 }
 0x23a   :  { %v747_v17 = vpop.f32.mrb[2].mxu0 }
 0x23b   :  { %v782_v18 = vpop.f32.mrb[2].mxu1  ;;  %v748_v20 = vpop.f32.mrb[3].mxu0 }
 0x23c   :  { %v749_v21 = vadd.f32 %v748_v20, %v747_v17  ;;  %v783_v22 = vpop.f32.mrb[3].mxu1 }
 0x23d   :  { %v784_v23 = vadd.f32 %v783_v22, %v782_v18 }
 0x23e   :  { %v518_v24 = vadd.f32 %v749_v21, %v714_v19 }
 0x240   :  { %v588_v25 = vadd.f32 %v784_v23, %v518_v24 }
 0x242   :  { %v591_v26 = vmax.f32 %v588_v25, 0.0 }
 0x244   :  { %v592_v27 = vmul.f32 %v591_v26, %v591_v26 }
 0x246   :  { %835 = vmatmul.mubr.f32.vlgmr.msra.gmra.mrb[4].mxu0 %v592_v27 }
 0x247   :  { %1167 = shalt.err (!%p1164_p8)
}
 0x248   :  { %s1168_s9 = scalar_lea.hbm %s1348_s7, 512 }
 0x249   :  { %p1169_p9 = scmp.ne.s32.totalorder %s1348_s7, %s1168_s9  ;;  %p1172_p10 = scmp.lt.u32.totalorder %s1168_s9, %s1348_s7 }
 0x24b   :  { %p1174_p11 = pnand %p1172_p10, %p1169_p9 }
 0x24d   :  { %1177 = shalt.err (!%p1174_p11)
}
 0x24e   :  { %702 = dma.vmem_to_hbm [thread:$0]  %s700_s29, 512, %s1348_s7, [#allocation12]  }
 0x24f   :  { %s1222_s15 = smov [#allocation10]  }
 0x250   :  { %s689_s16 = sshll.u32 %s1222_s15, 4  ;;  %s690_s16 = int_to_ptr.vmem [resolvable:$true] %s689_s16 }
 0x251   :  { %s1178_s17 = scalar_lea.vmem %s690_s16, 128  ;;  %p1183_p13 = scmp.lt.s32.totalorder %s690_s16, %s690_s16 }
 0x252   :  { %p1179_p12 = scmp.ne.s32.totalorder %s690_s16, %s1178_s17  ;;  %p1184_p0 = scmp.lt.s32.totalorder %s1178_s17, %s1178_s17 }
 0x254   :  { %p1185_p1 = por %p1184_p0, %p1183_p13 }
 0x256   :  { %p1186_p2 = pnand %p1185_p1, %p1179_p12 }
 0x319   :  { %v675_v28 = vpop.f32.mrb[4].mxu0 }
 0x31a   :  { %v679_v29 = vmax.f32 %v675_v28, 1e-24  ;;  %v836_v30 = vpop.f32.mrb[5].mxu0 }
 0x31c   :  { %1066 = vrsqrt.f32 %v679_v29 }
 0x326   :  { %v1067_v31 = vpop.eup %1066 }
 0x327   :  { %v681_v32 = vmul.f32 %v1067_v31, %v591_v26 }
 0x329   :  { %682 = vst [vmem:[#allocation10] sm:$0xff] %v681_v32 }
 0x32a   :  { %1189 = shalt.err (!%p1186_p2)
}
 0x32b   :  { %s1190_s7 = scalar_lea.hbm %s1347_s6, 128 }
 0x32c   :  { %p1191_p3 = scmp.ne.s32.totalorder %s1347_s6, %s1190_s7  ;;  %p1194_p4 = scmp.lt.u32.totalorder %s1190_s7, %s1347_s6 }
 0x32e   :  { %p1196_p5 = pnand %p1194_p4, %p1191_p3 }
 0x330   :  { %1199 = shalt.err (!%p1196_p5)
}
 0x331   :  { %692 = dma.vmem_to_hbm [thread:$0]  %s690_s16, 128, %s1347_s6, [#allocation4]  }
 0x332   :  { %1206 = dma.done.wait [#allocation4], 128  }
 0x333   :  { %1207 = vsyncadd [#allocation4], 4294967168 }
 0x334   :  { %1208 = dma.done.wait [#allocation12], 512  }
 0x335   :  { %1209 = vsyncadd [#allocation12], 4294966784 }
 0x336   :  { %709 = vsyncpa [#allocation3], 1 }
 0x337   :  { %710 = vsyncpa [#allocation6], 1 }
 0x338   :  { %711 = vsyncpa [#allocation9], 1 }
 0x339   :  { %712 = vsyncpa [#allocation4], 1 }
 0x33a   :  { %713 = vsyncpa [#allocation12], 1 }

</bundles_post_ra>
